<compile_context>
chip_gen: v7x
topology: tpu7x:2x2x1
jax: 0.10.0
libtpu: 0.0.40
codegen_flags: <defaults>
</compile_context>

<pallas_src>
import functools

import jax
import jax.numpy as jnp
from jax.experimental import pallas as pl
from jax.experimental.pallas import tpu as pltpu


def _dwconv_kernel(x_ref, w_ref, b_ref, o_ref, *, C):
    """One (batch, row-strip) grid step of the depthwise 3x3 conv.

    x_ref: (H, W*C)   lane-fused input image for this batch element (resident)
    w_ref: (9, W*C)   tap kh*3+kw, tiled across W on the lane axis
    b_ref: (1, W*C)   bias, tiled across W
    o_ref: (TH, W*C)  output row strip
    """
    H, L = x_ref.shape
    TH = o_ref.shape[0]
    f32 = jnp.float32

    h0 = pl.multiple_of(pl.program_id(1) * TH, TH)   # first output row of strip

    # ---- TH+2 input rows for this strip; H halo handled in-kernel ----------
    mid = x_ref[pl.ds(h0, TH), :].astype(f32)                          # rows h0..h0+TH-1
    top = x_ref[pl.ds(jnp.maximum(h0 - 1, 0), 1), :].astype(f32)       # row h0-1 (clamped)
    bot = x_ref[pl.ds(jnp.minimum(h0 + TH, H - 1), 1), :].astype(f32)  # row h0+TH (clamped)
    top = top * (h0 > 0).astype(f32)          # zero padding above the image
    bot = bot * (h0 + TH < H).astype(f32)     # zero padding below the image
    xs = jnp.concatenate([top, mid, bot], axis=0)                      # (TH+2, L)

    # ---- kw = -1 / +1 neighbours: lane roll by C, zero the wrapped lanes ----
    lane = jax.lax.broadcasted_iota(jnp.int32, (TH + 2, L), 1)
    x_wm = jnp.where(lane >= C, pltpu.roll(xs, shift=C, axis=1), 0.0)         # col w-1
    x_wp = jnp.where(lane < L - C, pltpu.roll(xs, shift=L - C, axis=1), 0.0)  # col w+1

    # ---- 9-tap accumulation (f32), accumulator initialized with the bias ----
    acc = jnp.broadcast_to(b_ref[...].astype(f32), (TH, L))
    for kh in range(3):                      # static unroll: 9 VPU mul-adds
        w_m = w_ref[pl.ds(3 * kh + 0, 1), :].astype(f32)   # (1, L) sublane bcast
        w_c = w_ref[pl.ds(3 * kh + 1, 1), :].astype(f32)
        w_p = w_ref[pl.ds(3 * kh + 2, 1), :].astype(f32)
        acc = acc + x_wm[kh:kh + TH, :] * w_m
        acc = acc + xs[kh:kh + TH, :] * w_c
        acc = acc + x_wp[kh:kh + TH, :] * w_p

    o_ref[...] = acc.astype(o_ref.dtype)


def dwconv(x, weight_hwc, bias, H, W, *, strip_rows=8):
    """Depthwise 3x3 conv.  x: (B, N, C) with N == H*W; weight_hwc: (3, 3, C);
    bias: (C,).  Returns (B, N, C)."""
    B, N, C = x.shape
    assert N == H * W
    L = W * C

    # (B, N, C) and (B, H, W*C) are the same memory layout -> free reshape,
    # no HBM pad / transpose pass.
    x_f = x.reshape(B, H, L)

    # Tile the 9 taps / bias across W so each is one full lane row (tiny,
    # parameter-sized work done once outside the kernel).
    w_f = jnp.tile(weight_hwc.reshape(9, 1, C), (1, W, 1)).reshape(9, L)
    b_f = jnp.tile(bias.reshape(1, 1, C), (1, W, 1)).reshape(1, L)

    # Strip height: a multiple of 8 sublanes dividing H, else the full H.
    th = min(strip_rows, H)
    if H % 8 == 0 and th >= 8:
        th -= th % 8
        while H % th:
            th -= 8
    else:
        th = H
    n_strips = H // th

    # Per-step VMEM footprint: double-buffered input/output blocks + resident
    # params + f32 temporaries; bound it explicitly (v7x has 64 MiB total,
    # v5e's default scoped limit is 16 MiB).
    itemsize = jnp.dtype(x.dtype).itemsize
    step_bytes = ((2 * H + 2 * th) * L * itemsize      # in/out double buffers
                  + 10 * L * itemsize                  # weights + bias
                  + 4 * (th + 2) * L * 4)              # xs / rolled copies / acc
    vmem_limit = int(min(100 * 2**20, max(32 * 2**20, 4 * step_bytes)))

    out = pl.pallas_call(
        functools.partial(_dwconv_kernel, C=C),
        out_shape=jax.ShapeDtypeStruct((B, H, L), x.dtype),
        grid=(B, n_strips),
        in_specs=[
            # Full-H image per batch; its block index only depends on b, so it
            # stays resident in VMEM across the row strips of that batch.
            pl.BlockSpec((None, H, L), lambda b, s: (b, 0, 0)),
            pl.BlockSpec((9, L), lambda b, s: (0, 0)),
            pl.BlockSpec((1, L), lambda b, s: (0, 0)),
        ],
        out_specs=pl.BlockSpec((None, th, L), lambda b, s: (b, s, 0)),
        compiler_params=pltpu.CompilerParams(
            dimension_semantics=("parallel", "parallel"),
            vmem_limit_bytes=vmem_limit,
        ),
    )(x_f, w_f, b_f)

    return out.reshape(B, N, C)


def reference_dwconv(x, weight_hwc, bias, H, W):
    """Pure-JAX reference mirroring PyTorch nn.Conv2d(groups=C)."""
    B, N, C = x.shape
    x_nchw = jnp.transpose(x, (0, 2, 1)).reshape(B, C, H, W)
    w_oihw = jnp.transpose(weight_hwc, (2, 0, 1))[:, None, :, :]
    y = jax.lax.conv_general_dilated(
        x_nchw, w_oihw,
        window_strides=(1, 1),
        padding=((1, 1), (1, 1)),
        feature_group_count=C,
        dimension_numbers=("NCHW", "OIHW", "NCHW"),
    )
    y = y + bias[None, :, None, None]
    return jnp.transpose(y.reshape(B, C, N), (0, 2, 1))


if __name__ == "__main__":
    key = jax.random.PRNGKey(0)
    kx, kw, kb = jax.random.split(key, 3)

    B, C, H, W = 2, 8, 16, 16          # W * C == 128 -> fully lane-dense
    N = H * W

    x = jax.random.normal(kx, (B, N, C), dtype=jnp.float32)
    # PyTorch weight (C, 1, 3, 3) is carried here as (3, 3, C); bias (C,).
    weight_hwc = jax.random.normal(kw, (3, 3, C), dtype=jnp.float32) * 0.1
    bias = jax.random.normal(kb, (C,), dtype=jnp.float32) * 0.1

    out = jax.block_until_ready(dwconv(x, weight_hwc, bias, H, W))
    ref = jax.block_until_ready(reference_dwconv(x, weight_hwc, bias, H, W))

    assert out.shape == (B, N, C)
    assert jnp.allclose(out, ref, atol=1e-5, rtol=1e-5), "mismatch vs reference"
    print("KERNEL_OK")
</pallas_src>

<mosaic_0001>
module attributes {stable_mosaic.version = 11 : i64} {
  func.func @_dwconv_kernel(%arg0: i32, %arg1: i32, %arg2: memref<1x16x128xf32, #tpu.memory_space<vmem>>, %arg3: memref<9x128xf32, #tpu.memory_space<vmem>>, %arg4: memref<1x128xf32, #tpu.memory_space<vmem>>, %arg5: memref<1x8x128xf32, #tpu.memory_space<vmem>>) attributes {dimension_semantics = [#tpu.dimension_semantics<parallel>, #tpu.dimension_semantics<parallel>], iteration_bounds = array<i64: 2, 2>, scalar_prefetch = 0 : i64, scratch_operands = 0 : i64, tpu.core_type = #tpu.core_type<tc>, window_params = [{transform_indices = @transform_0, window_bounds = array<i64: 1, 16, 128>}, {pipeline_mode = #tpu.pipeline_mode<synchronous>, transform_indices = @transform_1, window_bounds = array<i64: 9, 128>}, {pipeline_mode = #tpu.pipeline_mode<synchronous>, transform_indices = @transform_2, window_bounds = array<i64: 1, 128>}, {transform_indices = @transform_3, window_bounds = array<i64: 1, 8, 128>}]} {
    %c8_i32 = arith.constant 8 : i32
    %0 = arith.muli %arg1, %c8_i32 : i32
    %1 = tpu.assume_multiple %0, 8 : i32
    %c0 = arith.constant 0 : index
    %2 = arith.index_cast %1 : i32 to index
    %c0_0 = arith.constant 0 : index
    %3 = vector.load %arg2[%c0, %2, %c0_0] : memref<1x16x128xf32, #tpu.memory_space<vmem>>, vector<1x8x128xf32>
    %4 = vector.shape_cast %3 : vector<1x8x128xf32> to vector<8x128xf32>
    %c1_i32 = arith.constant 1 : i32
    %5 = arith.subi %1, %c1_i32 : i32
    %c0_i32 = arith.constant 0 : i32
    %6 = arith.maxsi %5, %c0_i32 : i32
    %c0_1 = arith.constant 0 : index
    %7 = arith.index_cast %6 : i32 to index
    %c0_2 = arith.constant 0 : index
    %8 = vector.load %arg2[%c0_1, %7, %c0_2] : memref<1x16x128xf32, #tpu.memory_space<vmem>>, vector<1x1x128xf32>
    %9 = vector.shape_cast %8 : vector<1x1x128xf32> to vector<1x128xf32>
    %c8_i32_3 = arith.constant 8 : i32
    %10 = arith.addi %1, %c8_i32_3 : i32
    %c15_i32 = arith.constant 15 : i32
    %11 = arith.minsi %10, %c15_i32 : i32
    %c0_4 = arith.constant 0 : index
    %12 = arith.index_cast %11 : i32 to index
    %c0_5 = arith.constant 0 : index
    %13 = vector.load %arg2[%c0_4, %12, %c0_5] : memref<1x16x128xf32, #tpu.memory_space<vmem>>, vector<1x1x128xf32>
    %14 = vector.shape_cast %13 : vector<1x1x128xf32> to vector<1x128xf32>
    %c0_i32_6 = arith.constant 0 : i32
    %15 = arith.cmpi sgt, %1, %c0_i32_6 : i32
    %16 = arith.extui %15 : i1 to i32
    %17 = arith.sitofp %16 : i32 to f32
    %18 = vector.broadcast %17 : f32 to vector<1x128xf32>
    %19 = arith.mulf %9, %18 : vector<1x128xf32>
    %c8_i32_7 = arith.constant 8 : i32
    %20 = arith.addi %1, %c8_i32_7 : i32
    %c16_i32 = arith.constant 16 : i32
    %21 = arith.cmpi slt, %20, %c16_i32 : i32
    %22 = arith.extui %21 : i1 to i32
    %23 = arith.sitofp %22 : i32 to f32
    %24 = vector.broadcast %23 : f32 to vector<1x128xf32>
    %25 = arith.mulf %14, %24 : vector<1x128xf32>
    %26 = tpu.concatenate %19, %4, %25 in 0 : vector<1x128xf32>, vector<8x128xf32>, vector<1x128xf32> -> vector<10x128xf32>
    %27 = tpu.iota {dimensions = array<i32: 1>} : vector<10x128xi32>
    %c8_i32_8 = arith.constant 8 : i32
    %28 = vector.broadcast %c8_i32_8 : i32 to vector<10x128xi32>
    %29 = arith.cmpi sge, %27, %28 : vector<10x128xi32>
    %c8_i32_9 = arith.constant 8 : i32
    %30 = tpu.dynamic_rotate %26 by %c8_i32_9 dim 1 : vector<10x128xf32>, i32 -> vector<10x128xf32>
    %cst = arith.constant 0.000000e+00 : f32
    %31 = vector.broadcast %cst : f32 to vector<10x128xf32>
    %32 = arith.select %29, %30, %31 : vector<10x128xi1>, vector<10x128xf32>
    %c120_i32 = arith.constant 120 : i32
    %33 = vector.broadcast %c120_i32 : i32 to vector<10x128xi32>
    %34 = arith.cmpi slt, %27, %33 : vector<10x128xi32>
    %c120_i32_10 = arith.constant 120 : i32
    %35 = tpu.dynamic_rotate %26 by %c120_i32_10 dim 1 : vector<10x128xf32>, i32 -> vector<10x128xf32>
    %cst_11 = arith.constant 0.000000e+00 : f32
    %36 = vector.broadcast %cst_11 : f32 to vector<10x128xf32>
    %37 = arith.select %34, %35, %36 : vector<10x128xi1>, vector<10x128xf32>
    %c0_12 = arith.constant 0 : index
    %c0_13 = arith.constant 0 : index
    %38 = vector.load %arg4[%c0_12, %c0_13] : memref<1x128xf32, #tpu.memory_space<vmem>>, vector<1x128xf32>
    %39 = vector.shape_cast %38 : vector<1x128xf32> to vector<1x128xf32>
    %40 = vector.broadcast %39 : vector<1x128xf32> to vector<8x128xf32>
    %c0_14 = arith.constant 0 : index
    %c0_15 = arith.constant 0 : index
    %41 = vector.load %arg3[%c0_14, %c0_15] : memref<9x128xf32, #tpu.memory_space<vmem>>, vector<1x128xf32>
    %c1 = arith.constant 1 : index
    %c0_16 = arith.constant 0 : index
    %42 = vector.load %arg3[%c1, %c0_16] : memref<9x128xf32, #tpu.memory_space<vmem>>, vector<1x128xf32>
    %c2 = arith.constant 2 : index
    %c0_17 = arith.constant 0 : index
    %43 = vector.load %arg3[%c2, %c0_17] : memref<9x128xf32, #tpu.memory_space<vmem>>, vector<1x128xf32>
    %44 = vector.extract_strided_slice %32 {offsets = [0, 0], sizes = [8, 128], strides = [1, 1]} : vector<10x128xf32> to vector<8x128xf32>
    %45 = vector.broadcast %41 : vector<1x128xf32> to vector<8x128xf32>
    %46 = arith.mulf %44, %45 : vector<8x128xf32>
    %47 = arith.addf %40, %46 : vector<8x128xf32>
    %48 = vector.extract_strided_slice %26 {offsets = [0, 0], sizes = [8, 128], strides = [1, 1]} : vector<10x128xf32> to vector<8x128xf32>
    %49 = vector.broadcast %42 : vector<1x128xf32> to vector<8x128xf32>
    %50 = arith.mulf %48, %49 : vector<8x128xf32>
    %51 = arith.addf %47, %50 : vector<8x128xf32>
    %52 = vector.extract_strided_slice %37 {offsets = [0, 0], sizes = [8, 128], strides = [1, 1]} : vector<10x128xf32> to vector<8x128xf32>
    %53 = vector.broadcast %43 : vector<1x128xf32> to vector<8x128xf32>
    %54 = arith.mulf %52, %53 : vector<8x128xf32>
    %55 = arith.addf %51, %54 : vector<8x128xf32>
    %c3 = arith.constant 3 : index
    %c0_18 = arith.constant 0 : index
    %56 = vector.load %arg3[%c3, %c0_18] : memref<9x128xf32, #tpu.memory_space<vmem>>, vector<1x128xf32>
    %c4 = arith.constant 4 : index
    %c0_19 = arith.constant 0 : index
    %57 = vector.load %arg3[%c4, %c0_19] : memref<9x128xf32, #tpu.memory_space<vmem>>, vector<1x128xf32>
    %c5 = arith.constant 5 : index
    %c0_20 = arith.constant 0 : index
    %58 = vector.load %arg3[%c5, %c0_20] : memref<9x128xf32, #tpu.memory_space<vmem>>, vector<1x128xf32>
    %59 = vector.extract_strided_slice %32 {offsets = [1, 0], sizes = [8, 128], strides = [1, 1]} : vector<10x128xf32> to vector<8x128xf32>
    %60 = vector.broadcast %56 : vector<1x128xf32> to vector<8x128xf32>
    %61 = arith.mulf %59, %60 : vector<8x128xf32>
    %62 = arith.addf %55, %61 : vector<8x128xf32>
    %63 = vector.extract_strided_slice %26 {offsets = [1, 0], sizes = [8, 128], strides = [1, 1]} : vector<10x128xf32> to vector<8x128xf32>
    %64 = vector.broadcast %57 : vector<1x128xf32> to vector<8x128xf32>
    %65 = arith.mulf %63, %64 : vector<8x128xf32>
    %66 = arith.addf %62, %65 : vector<8x128xf32>
    %67 = vector.extract_strided_slice %37 {offsets = [1, 0], sizes = [8, 128], strides = [1, 1]} : vector<10x128xf32> to vector<8x128xf32>
    %68 = vector.broadcast %58 : vector<1x128xf32> to vector<8x128xf32>
    %69 = arith.mulf %67, %68 : vector<8x128xf32>
    %70 = arith.addf %66, %69 : vector<8x128xf32>
    %c6 = arith.constant 6 : index
    %c0_21 = arith.constant 0 : index
    %71 = vector.load %arg3[%c6, %c0_21] : memref<9x128xf32, #tpu.memory_space<vmem>>, vector<1x128xf32>
    %c7 = arith.constant 7 : index
    %c0_22 = arith.constant 0 : index
    %72 = vector.load %arg3[%c7, %c0_22] : memref<9x128xf32, #tpu.memory_space<vmem>>, vector<1x128xf32>
    %c8 = arith.constant 8 : index
    %c0_23 = arith.constant 0 : index
    %73 = vector.load %arg3[%c8, %c0_23] : memref<9x128xf32, #tpu.memory_space<vmem>>, vector<1x128xf32>
    %74 = vector.extract_strided_slice %32 {offsets = [2, 0], sizes = [8, 128], strides = [1, 1]} : vector<10x128xf32> to vector<8x128xf32>
    %75 = vector.broadcast %71 : vector<1x128xf32> to vector<8x128xf32>
    %76 = arith.mulf %74, %75 : vector<8x128xf32>
    %77 = arith.addf %70, %76 : vector<8x128xf32>
    %78 = vector.extract_strided_slice %26 {offsets = [2, 0], sizes = [8, 128], strides = [1, 1]} : vector<10x128xf32> to vector<8x128xf32>
    %79 = vector.broadcast %72 : vector<1x128xf32> to vector<8x128xf32>
    %80 = arith.mulf %78, %79 : vector<8x128xf32>
    %81 = arith.addf %77, %80 : vector<8x128xf32>
    %82 = vector.extract_strided_slice %37 {offsets = [2, 0], sizes = [8, 128], strides = [1, 1]} : vector<10x128xf32> to vector<8x128xf32>
    %83 = vector.broadcast %73 : vector<1x128xf32> to vector<8x128xf32>
    %84 = arith.mulf %82, %83 : vector<8x128xf32>
    %85 = arith.addf %81, %84 : vector<8x128xf32>
    %c0_24 = arith.constant 0 : index
    %c0_25 = arith.constant 0 : index
    %c0_26 = arith.constant 0 : index
    %86 = vector.load %arg5[%c0_24, %c0_25, %c0_26] : memref<1x8x128xf32, #tpu.memory_space<vmem>>, vector<1x8x128xf32>
    %87 = vector.shape_cast %86 : vector<1x8x128xf32> to vector<8x128xf32>
    %88 = vector.shape_cast %85 : vector<8x128xf32> to vector<1x8x128xf32>
    tpu.vector_store %arg5[%c0_24, %c0_25, %c0_26], %88 {strides = array<i32>} : memref<1x8x128xf32, #tpu.memory_space<vmem>>, vector<1x8x128xf32>,
    return
  }
  func.func @transform_0(%arg0: i32, %arg1: i32) -> (i32, i32, i32) {
    %c0_i32 = arith.constant 0 : i32
    %c0_i32_0 = arith.constant 0 : i32
    %c0_i32_1 = arith.constant 0 : i32
    return %arg0, %c0_i32, %c0_i32_0 : i32, i32, i32
  }
  func.func @transform_1(%arg0: i32, %arg1: i32) -> (i32, i32) {
    %c0_i32 = arith.constant 0 : i32
    %c0_i32_0 = arith.constant 0 : i32
    %c0_i32_1 = arith.constant 0 : i32
    return %c0_i32, %c0_i32_0 : i32, i32
  }
  func.func @transform_2(%arg0: i32, %arg1: i32) -> (i32, i32) {
    %c0_i32 = arith.constant 0 : i32
    %c0_i32_0 = arith.constant 0 : i32
    %c0_i32_1 = arith.constant 0 : i32
    return %c0_i32, %c0_i32_0 : i32, i32
  }
  func.func @transform_3(%arg0: i32, %arg1: i32) -> (i32, i32, i32) {
    %c0_i32 = arith.constant 0 : i32
    %c0_i32_0 = arith.constant 0 : i32
    return %arg0, %arg1, %c0_i32 : i32, i32, i32
  }
}

</mosaic_0001>

<bundles_post_ra>
// kernel: tpu_custom_call.1
= control target key start
LH: loop header
LB: loop body
LE: loop exit
PB: predicated region body
PF: predicated region fallthrough
CT: control target
= control target key end

     0   :  { %s1137_s0 = inlined_call_operand.hbm [shape: f32[2,16,128], index: 0, kind: input, shape index: {}]   ;;  %s1138_s1 = inlined_call_operand.hbm [shape: f32[9,128], index: 1, kind: input, shape index: {}]   ;;  %s1139_s2 = inlined_call_operand.vmem [shape: f32[1,128], index: 2, kind: input, shape index: {}]   ;;  %s1140_s3 = inlined_call_operand.hbm [shape: f32[2,16,128], index: 3, kind: output, shape index: {}]  }
   0x1   :  { %1153 = sst [smem:[#allocation16_spill]] %s1138_s1 }
   0x2   :  { %8 = vsyncpa [#allocation3], 0 }
   0x3   :  { %10 = vsyncpa [#allocation3 + $0x1], 0 }
   0x4   :  { %11 = vsyncpa [#allocation6], 0 }
   0x5   :  { %12 = vsyncpa [#allocation4], 0 }
   0x6   :  { %14 = vsyncpa [#allocation4 + $0x1], 0  ;;  %s854_s12 = smov 0   ;;  %s856_s13 = smov 0  }
   0x7   :  { %s858_s14 = smov 0   ;;  %s860_s15 = smov 0  }
   0x8   :  { %s862_s16 = smov 0   ;;  %s864_s17 = smov 0  }
   0x9   :  { %s866_s18 = smov 0   ;;  %s868_s19 = smov 0  }
   0xa   :  { %s870_s20 = smov 0   ;;  %s872_s21 = smov 0  }
   0xb   :  { %s874_s22 = smov 0  }
   0xc LB: > { %1154 = sst [smem:[#allocation11_spill]] %s785_s12  ;;  %s494_s23 = sadd.s32 4294967295, %s825_s22   ;;  %s825_s22 = sphi %s874_s22, %s20_s22   ;;  %s821_s21 = sphi %s872_s21, %s1187_s21   ;;  %s817_s20 = sphi %s870_s20, %s1178_s20   ;;  %s813_s19 = sphi %s868_s19, %s1186_s19   ;;  %s809_s18 = sphi %s866_s18, %s1177_s18   ;;  %s805_s17 = sphi %s864_s17, %s1185_s17   ;;  %s801_s16 = sphi %s862_s16, %s1184_s16   ;;  %s797_s15 = sphi %s860_s15, %s1183_s15   ;;  %s793_s14 = sphi %s858_s14, %s1182_s14   ;;  %s789_s13 = sphi %s856_s13, %s1181_s13   ;;  %s785_s12 = sphi %s854_s12, %s1180_s12  }
   0xd   : > { %1155 = sst [smem:[#allocation12_spill]] %s817_s20  ;;  %s495_s24 = sadd.s32 4294967294, %s825_s22  }
   0xe   : > { %p52_p0 = scmp.ne.s32.totalorder %s801_s16, %s797_s15  ;;  %p910_p1 = scmp.eq.s32.totalorder %s494_s23, 0 }
   0xf   : > { %s109_s26 = sadd.s32 1, %s793_s14  ;;  %p119_p2 = scmp.ne.s32.totalorder %s793_s14, %s789_s13 }
  0x10   : > { %s1156_s25 = scalar_select %p910_p1, 1, 0 }
  0x11   : > { %p919_p3 = por %p910_p1, %p52_p0  ;;  %p120_p4 = scmp.eq.s32.totalorder %s494_s23, 3 }
  0x12   : > { %p125_p5 = scmp.ne.s32.totalorder %s789_s13, %s785_s12  ;;  %p126_p6 = scmp.eq.s32.totalorder %s495_s24, 3 }
  0x13   : > { %s1157_s27 = scalar_select %p919_p3, 1, 0 }
  0x14   : > { %p925_p7 = por %p120_p4, %p119_p2  ;;  %p496_p8 = scmp.ge.s32.totalorder %s825_s22, 1 }
  0x15   : > { %p930_p9 = por %p126_p6, %p125_p5  ;;  %p133_p10 = scmp.lt.s32.totalorder %s825_s22, 5 }
  0x16   : > { %s1158_s28 = scalar_select %p925_p7, 1, 0 }
  0x17   : > { %s1159_s29 = scalar_select %p930_p9, 1, 0 }
  0x18   : > { %p935_p11 = pnand %p496_p8, %p133_p10  ;;  %s827_s4 = smov [#allocation5]  }
  0x19   : > { %1160 = sst [smem:[#allocation13_spill]] %s1159_s29  ;;  %s145_s5 = sshll.u32 %s827_s4, 4  ;;  %s146_s5 = int_to_ptr.vmem [resolvable:$true] %s145_s5 }
  0x1a   : > { %s1161_s30 = scalar_select %p935_p11, 1, 0 }
  0x1b   : > { %p532_p12 = pneg %p935_p11  ;;  %s1163_s1 = sld [smem:[#allocation16_spill]] }
  0x1d   : > { %p943_p13 = pnand %p532_p12, %p910_p1 }
  0x1f   : > { %p643_p2 = pneg %p943_p13 }
  0x21   : > { %s641_s9 = scalar_lea.hbm %s1163_s1, 256 }
  0x22   : > { %p642_p0 = scmp.ne.s32.totalorder %s1163_s1, %s641_s9  ;;  %p648_p6 = scmp.lt.u32.totalorder %s641_s9, %s1163_s1 }
  0x24   : > { %p644_p4 = pnand %p643_p2, %p642_p0 }
  0x26   : > { %p645_p5 = pneg %p644_p4 }
  0x28   : > { %p650_p8 = pnand %p648_p6, %p645_p5 }
  0x2a   : > { %653 = shalt.err (!%p650_p8)
}
  0x2b   : > { %s654_s24 = scalar_lea.vmem %s146_s5, 256  ;;  %p662_p7 = scmp.lt.s32.totalorder %s146_s5, %s146_s5 }
  0x2c   : > { %p655_p10 = scmp.ne.s32.totalorder %s146_s5, %s654_s24  ;;  %p663_p1 = scmp.lt.s32.totalorder %s654_s24, %s654_s24 }
  0x2e   : > { %p657_p12 = pnand %p655_p10, %p643_p2  ;;  %p664_p3 = por %p663_p1, %p662_p7 }
  0x30   : > { %p658_p9 = pneg %p657_p12 }
  0x32   : > { %p665_p11 = pnand %p664_p3, %p658_p9 }
  0x34   : > { %668 = shalt.err (!%p665_p11)
}
  0x35   : > { %s1146_s4 = smov 128   ;;  %s1147_s7 = smov 8  }
  0x36   : > { %535 = dma.hbm_to_vmem [thread:$0]  (!%p943_p13), %s1163_s1, 256, %s146_s5, [#allocation6], %s1146_s4, %s1146_s4, %s1147_s7  }
  0x37   : > { %s29_s10 = sadd.s32 1, %s817_s20  ;;  %s32_s11 = sadd.s32 1, %s821_s21 }
  0x38   : > { %p30_p1 = scmp.ge.s32.totalorder %s29_s10, 2  ;;  %s39_s15 = sadd.s32 1, %s805_s17 }
  0x39   : > { %p46_p3 = scmp.ne.s32.totalorder %s805_s17, %s801_s16  ;;  %p47_p7 = scmp.eq.s32.totalorder %s825_s22, 0 }
  0x3a   : > { %s1189_s10 = smov (%p30_p1, %s29_s10), 0  ;;  %s1191_s11 = smov (!%p30_p1, %s32_s11), %s821_s21 }
  0x3b   : > { %1164 = sst [smem:[#allocation14_spill]] %s1189_s10  ;;  %s105_s6 = ssub.s32 %s817_s20, %s1189_s10 }
  0x3c   : > { %p34_p9 = scmp.ge.s32.totalorder %s1191_s11, 2  ;;  %p545_p11 = scmp.lt.s32.totalorder %s825_s22, 4 }
  0x3d   : > { %p978_p13 = por %p47_p7, %p46_p3  ;;  %s162_s23 = sand.u32 1, %s805_s17  }
  0x3e   : > { %s1193_s11 = smov (%p34_p9, %s1191_s11), 0  ;;  %s499_s24 = sshll.u32 %s162_s23, 4 }
  0x3f   : > { %1166 = sst [smem:[#allocation15_spill]] %s1193_s11  ;;  %s36_s8 = ssub.s32 %s821_s21, %s1193_s11 }
  0x40   : > { %p37_p0 = scmp.eq.s32.totalorder %s36_s8, 0  ;;  %s106_s9 = sor.u32 %s105_s6, %s36_s8 }
  0x41   : > { %p107_p2 = scmp.eq.s32.totalorder %s106_s9, 0  ;;  %s523_s4 = sshll.u32 %s821_s21, 8 }
  0x42   : > { %s989_s7 = scalar_select %p37_p0, %s805_s17, %s39_s15  }
  0x43   : > { %s994_s1 = scalar_select %p107_p2, %s793_s14, %s109_s26  }
  0x44   : > { %s999_s29 = scalar_lea.hbm %s1137_s0, %s523_s4  ;;  %s166_s12 = scalar_lea.vmem [#allocation2], %s499_s24 }
  0x45   : > { %s173_s11 = sshll.u32 %s166_s12, 4  ;;  %p1007_p4 = pnand %p545_p11, %p978_p13  ;;  %s1001_s11 = int_to_ptr.vmem [resolvable:$true] %s173_s11 }
  0x46   : > { %s1011_s26 = scalar_lea.sflag [#allocation3], %s162_s23  ;;  %s669_s20 = scalar_lea.hbm %s999_s29, 256 }
  0x47   : > { %p670_p5 = scmp.ne.s32.totalorder %s999_s29, %s669_s20  ;;  %p671_p6 = pneg %p1007_p4 }
  0x48   : > { %s674_s10 = scalar_lea.hbm %s1137_s0, 512  ;;  %p675_p12 = scmp.lt.u32.totalorder %s999_s29, %s1137_s0 }
  0x49   : > { %p672_p8 = pnand %p671_p6, %p670_p5  ;;  %p676_p1 = scmp.lt.u32.totalorder %s674_s10, %s669_s20 }
  0x4a   : > { %p678_p7 = scmp.lt.u32.totalorder %s669_s20, %s999_s29 }
  0x4b   : > { %p673_p10 = pneg %p672_p8  ;;  %p677_p3 = por %p676_p1, %p675_p12 }
  0x4d   : > { %p679_p9 = por %p678_p7, %p677_p3 }
  0x4f   : > { %p680_p11 = pnand %p679_p9, %p673_p10 }
  0x51   : > { %683 = shalt.err (!%p680_p11)
}
  0x52   : > { %s684_s23 = scalar_lea.vmem %s1001_s11, 256  ;;  %s830_s24 = smov [#allocation2]  }
  0x53   : > { %p685_p13 = scmp.ne.s32.totalorder %s1001_s11, %s684_s23  ;;  %s689_s8 = sshll.u32 %s830_s24, 4  ;;  %s690_s8 = int_to_ptr.vmem [resolvable:$false] %s689_s8 }
  0x54   : > { %s691_s9 = scalar_lea.vmem %s690_s8, 512  ;;  %p692_p5 = scmp.lt.s32.totalorder %s1001_s11, %s690_s8 }
  0x55   : > { %p687_p0 = pnand %p685_p13, %p671_p6  ;;  %p693_p8 = scmp.lt.s32.totalorder %s691_s9, %s684_s23 }
  0x57   : > { %p688_p2 = pneg %p687_p0  ;;  %p694_p12 = por %p693_p8, %p692_p5 }
  0x59   : > { %p695_p1 = pnand %p694_p12, %p688_p2 }
  0x5b   : > { %698 = shalt.err (!%p695_p1)
}
  0x5c   : > { %s1168_s20 = smov 8   ;;  %s1169_s12 = smov 128  }
  0x5d   : > { %539 = dma.hbm_to_vmem [thread:$0]  (!%p1007_p4), %s999_s29, 256, %s1001_s11, %s1011_s26, %s1169_s12, %s1169_s12, %s1168_s20  }
  0x5e   : > { %p1170_p6 = scmp.ne.s32.totalorder %s1161_s30, 0 }
  0x5f   : > { %s187_s4 = sand.u32 (!%p1170_p6), 1, %s801_s16   ;;  %p1171_p10 = scmp.ne.s32.totalorder (!%p1170_p6), %s1157_s27, 0 }
  0x60   : > { %185 = sbr.rel (%p1170_p6) target bundleno = 272 (0x110), region = 32  ;;  %s503_s10 = sshll.u32 (!%p1170_p6), %s187_s4, 4 }
  0x61   : > { %s188_s6 = scalar_lea.sflag (!%p1170_p6), [#allocation3], %s187_s4  ;;  %s191_s5 = scalar_lea.vmem (!%p1170_p6), [#allocation2], %s503_s10 }
  0x67   : > { %772 = dma.done.wait (%p1171_p10), %s188_s6, 256  }
  0x68   : > { %774 = vsyncadd (%p1171_p10), %s188_s6, 4294967040  ;;  %p1172_p3 = scmp.ne.s32.totalorder %s1156_s25, 0 }
  0x6a   : > { %776 = dma.done.wait (%p1172_p3), [#allocation6], 256  }
  0x6b   : > { %778 = vsyncadd (%p1172_p3), [#allocation6], 4294967040  ;;  %s506_s29 = sshll.u32 %s809_s18, 3  ;;  %vm247_vm0 = vcmask 1040384   ;;  %v513_v7 = vld [vmem:[#allocation5 + $0x4] ss:$0 sm:$0xff]  ;;  %v250_v23 = vlaneseq }
  0x6c   : > { %s507_s30 = sadd.s32 4294967295, %s506_s29  ;;  %p231_p7 = scmp.gt.s32.totalorder %s506_s29, 0  ;;  %v516_v8 = vld [vmem:[#allocation5 + $0x7] ss:$0 sm:$0xff]  ;;  %vm305_vm1 = vcmask 1046528   ;;  %vm348_vm2 = vcmask 1045504  }
  0x6d   : > { %p222_p4 = scmp.gt.s32.totalorder %s507_s30, 0  ;;  %s219_s11 = scalar_lea.vmem %s191_s5, %s506_s29 [#allocation2]  ;;  %v251_v24 = vand.u32 127, %v250_v23  ;;  %v509_v25 = vld [vmem:[#allocation5] ss:$0 sm:$0xff]  ;;  %v510_v26 = vld [vmem:[#allocation5 + $0x1] ss:$0 sm:$0xff] }
  0x6e   : > { %s226_s15 = sadd.s32 8, %s506_s29  ;;  %v220_v0 = vld [vmem:[%s219_s11] sm:$0xff]  ;;  %s831_s9 = smov 120   ;;  %v517_v53 = vld [vmem:[#allocation5 + $0x8] ss:$0 sm:$0xff] }
  0x6f   : > { %s1195_s30 = smov (!%p222_p4, %s507_s30), 0  ;;  %p227_p9 = scmp.lt.s32.totalorder %s226_s15, 15  ;;  %v242_v2 = vrot.slane %v220_v0, 7  ;;  %vm252_vm3 = vcmp.ge.s32.totalorder %v251_v24, 8  ;;  %vm259_vm4 = vcmp.lt.s32.totalorder %v251_v24, 120 }
  0x70   : > { %s232_s26 = scalar_select %p231_p7, 1, 0  ;;  %v508_v29 = vld [vmem:[%s1139_s2] ss:$0 sm:$0xff]  ;;  %v511_v31 = vld [vmem:[#allocation5 + $0x2] ss:$0 sm:$0xff] }
  0x71   : > { %s224_s23 = scalar_lea.vmem %s191_s5, %s1195_s30 [#allocation2]  ;;  %p236_p11 = scmp.lt.s32.totalorder %s226_s15, 16  ;;  %v512_v35 = vld [vmem:[#allocation5 + $0x3] ss:$0 sm:$0xff]  ;;  %v514_v38 = vld [vmem:[#allocation5 + $0x5] ss:$0 sm:$0xff] }
  0x72   : > { %v225_v1 = vld [vmem:[%s224_s23] sm:$0x1]  ;;  %s233_s27 = scvt.s32.f32 %s232_s26  ;;  %s1197_s15 = smov (!%p227_p9, %s226_s15), 15  ;;  %v515_v49 = vld [vmem:[#allocation5 + $0x6] ss:$0 sm:$0xff] }
  0x73   : > { %s237_s25 = scalar_select %p236_p11, 1, 0 }
  0x74   : > { %v234_v3 = vstv %s233_s27  ;;  %s229_s24 = scalar_lea.vmem %s191_s5, %s1197_s15 [#allocation2]  ;;  %s832_s20 = smov 8  }
  0x75   : > { %v235_v4 = vmul.f32 %v234_v3, %v225_v1  ;;  %v230_v5 = vld [vmem:[%s229_s24] sm:$0x1]  ;;  %s238_s8 = scvt.s32.f32 %s237_s25  ;;  %s215_s10 = sand.u32 1, %s789_s13  }
  0x76   : > { %s505_s6 = sshll.u32 %s215_s10, 3  ;;  %s519_s5 = sshll.u32 %s813_s19, 1 }
  0x77   : > { %v248_v6 = vsel %vm247_vm0, %v235_v4, %v242_v2  ;;  %v239_v9 = vstv %s238_s8  ;;  %s393_s29 = sadd.s32 %s809_s18, %s519_s5  ;;  %s217_s11 = scalar_lea.vmem [#allocation7], %s505_s6 }
  0x78   : > { %260 = vrot.lane.b32.xlu1 %v248_v6, %s831_s9  ;;  %253 = vrot.lane.b32.xlu0 %v248_v6, %s832_s20  ;;  %v240_v10 = vmul.f32 %v239_v9, %v230_v5  ;;  %v315_v11 = vmul.f32 %v513_v7, %v248_v6  ;;  %v358_v12 = vmul.f32 %v516_v8, %v248_v6  ;;  %s520_s30 = sshll.u32 %s393_s29, 7  ;;  %s397_s15 = sshll.u32 %s217_s11, 4  ;;  %s1077_s15 = int_to_ptr.vmem [resolvable:$true] %s397_s15 }
  0x79   : > { %v286_v34 = vmul.f32 %v510_v26, %v248_v6  ;;  %s1075_s23 = scalar_lea.hbm %s1140_s3, %s520_s30  ;;  %s382_s18 = scalar_lea.sflag [#allocation4], %s215_s10 }
  0x7a   : > { %v245_v13 = vrot.slane %v240_v10, 7  ;;  %v319_v17 = vrot.slane %v315_v11, 1  ;;  %v362_v18 = vrot.slane %v358_v12, 2  ;;  %s699_s27 = scalar_lea.vmem %s1077_s15, 128  ;;  %p1173_p0 = scmp.ne.s32.totalorder %s1158_s28, 0 }
  0x7b   : > { %p700_p13 = scmp.ne.s32.totalorder %s1077_s15, %s699_s27  ;;  %s833_s25 = smov [#allocation7]  }
  0x7c   : > { %v249_v14 = vsel %vm247_vm0, %v242_v2, %v245_v13  ;;  %s703_s24 = sshll.u32 %s833_s25, 4  ;;  %s704_s24 = int_to_ptr.vmem [resolvable:$false] %s703_s24 }
  0x7d   : > { %v316_v15 = vmul.f32 %v513_v7, %v249_v14  ;;  %v359_v16 = vmul.f32 %v516_v8, %v249_v14  ;;  %262 = vrot.lane.b32.xlu1 %v249_v14, %s831_s9  ;;  %255 = vrot.lane.b32.xlu0 %v249_v14, %s832_s20  ;;  %p701_p2 = pnand %p700_p13, %p1173_p0  ;;  %s705_s8 = scalar_lea.vmem %s704_s24, 256 }
  0x7e   : > { %p706_p8 = scmp.lt.s32.totalorder %s1077_s15, %s704_s24  ;;  %p707_p12 = scmp.lt.s32.totalorder %s705_s8, %s699_s27 }
  0x7f   : > { %v320_v19 = vrot.slane %v316_v15, 1  ;;  %v363_v20 = vrot.slane %v359_v16, 2  ;;  %p702_p5 = pneg %p701_p2 }
  0x80   : > { %p708_p1 = por %p707_p12, %p706_p8 }
  0x81   : > { %v321_v21 = vsel %vm305_vm1, %v319_v17, %v320_v19  ;;  %v364_v22 = vsel %vm348_vm2, %v362_v18, %v363_v20 }
  0x82   : > { %p709_p6 = pnand %p708_p1, %p702_p5 }
  0xea   : > { %v261_v27 = vpop.permute.xlu1 %260  ;;  %v254_v28 = vpop.permute.xlu0 %253 }
  0xeb   : > { %v257_v30 = vsel %vm252_vm3, %v254_v28, 0.0  ;;  %v264_v32 = vsel %vm259_vm4, %v261_v27, 0.0 }
  0xec   : > { %v280_v33 = vmul.f32 %v509_v25, %v257_v30  ;;  %v292_v37 = vmul.f32 %v511_v31, %v264_v32  ;;  %v301_v41 = vmul.f32 %v512_v35, %v257_v30  ;;  %v328_v45 = vmul.f32 %v514_v38, %v264_v32 }
  0xed   : > { %v344_v56 = vmul.f32 %v515_v49, %v257_v30  ;;  %v371_v59 = vmul.f32 %v517_v53, %v264_v32 }
  0xee   : > { %v281_v36 = vadd.f32 %v508_v29, %v280_v33  ;;  %v306_v50 = vrot.slane %v301_v41, 1  ;;  %v332_v54 = vrot.slane %v328_v45, 1 }
  0xef   : > { %v263_v40 = vpop.permute.xlu1 %262  ;;  %v256_v42 = vpop.permute.xlu0 %255  ;;  %v349_v0 = vrot.slane %v344_v56, 2  ;;  %v375_v2 = vrot.slane %v371_v59, 2 }
  0xf0   : > { %v287_v39 = vadd.f32 %v286_v34, %v281_v36  ;;  %v265_v43 = vsel %vm259_vm4, %v263_v40, 0.0  ;;  %v258_v44 = vsel %vm252_vm3, %v256_v42, 0.0 }
  0xf1   : > { %v329_v46 = vmul.f32 %v514_v38, %v265_v43  ;;  %v302_v47 = vmul.f32 %v512_v35, %v258_v44  ;;  %v345_v52 = vmul.f32 %v515_v49, %v258_v44  ;;  %v372_v60 = vmul.f32 %v517_v53, %v265_v43 }
  0xf2   : > { %v293_v48 = vadd.f32 %v292_v37, %v287_v39 }
  0xf3   : > { %v307_v51 = vrot.slane %v302_v47, 1  ;;  %v333_v55 = vrot.slane %v329_v46, 1  ;;  %v350_v61 = vrot.slane %v345_v52, 2  ;;  %v376_v3 = vrot.slane %v372_v60, 2 }
  0xf5   : > { %v308_v57 = vsel %vm305_vm1, %v306_v50, %v307_v51  ;;  %v334_v63 = vsel %vm305_vm1, %v332_v54, %v333_v55  ;;  %v351_v4 = vsel %vm348_vm2, %v349_v0, %v350_v61  ;;  %v377_v7 = vsel %vm348_vm2, %v375_v2, %v376_v3 }
  0xf6   : > { %v310_v58 = vadd.f32 %v308_v57, %v293_v48 }
  0xf8   : > { %v323_v62 = vadd.f32 %v321_v21, %v310_v58 }
  0xfa   : > { %v336_v1 = vadd.f32 %v334_v63, %v323_v62 }
  0xfc   : > { %v353_v5 = vadd.f32 %v351_v4, %v336_v1 }
  0xfe   : > { %v366_v6 = vadd.f32 %v364_v22, %v353_v5 }
 0x100   : > { %v379_v8 = vadd.f32 %v377_v7, %v366_v6 }
 0x102   : > { %380 = vst [vmem:[%s217_s11] sm:$0xff] %v379_v8 }
 0x103   : > { %712 = shalt.err (!%p709_p6)
}
 0x104   : > { %s713_s9 = scalar_lea.hbm %s1075_s23, 128  ;;  %s717_s4 = scalar_lea.hbm %s1140_s3, 512 }
 0x105   : > { %p714_p10 = scmp.ne.s32.totalorder %s1075_s23, %s713_s9  ;;  %p718_p7 = scmp.lt.u32.totalorder %s1075_s23, %s1140_s3 }
 0x106   : > { %p719_p9 = scmp.lt.u32.totalorder %s717_s4, %s713_s9  ;;  %p721_p13 = scmp.lt.u32.totalorder %s713_s9, %s1075_s23 }
 0x107   : > { %p715_p3 = pnand %p714_p10, %p1173_p0 }
 0x108   : > { %p720_p11 = por %p719_p9, %p718_p7 }
 0x109   : > { %p716_p4 = pneg %p715_p3 }
 0x10a   : > { %p722_p2 = por %p721_p13, %p720_p11 }
 0x10c   : > { %p723_p5 = pnand %p722_p2, %p716_p4 }
 0x10e   : > { %726 = shalt.err (!%p723_p5)
}
 0x10f   : > { %530 = dma.vmem_to_hbm [thread:$0]  (%p1173_p0), %s1077_s15, 128, %s1075_s23, %s382_s18  }
 0x110 PF: > { %s1174_s5 = sld [smem:[#allocation11_spill]]  ;;  %s1175_s29 = sld [smem:[#allocation13_spill]] }
 0x111   : > { %p547_p8 = scmp.ge.s32.totalorder %s825_s22, 2 }
 0x116   : > { %s409_s30 = sand.u32 1, %s1174_s5   ;;  %p1176_p12 = scmp.ne.s32.totalorder %s1175_s29, 0 }
 0x117   : > { %s410_s11 = scalar_lea.sflag [#allocation4], %s409_s30 }
 0x118   : > { %p541_p1 = pnand %p547_p8, %p1176_p12 }
 0x11a   : > { %780 = dma.done.wait (!%p541_p1), %s410_s11, 128  }
 0x11b   : > { %782 = vsyncadd (!%p541_p1), %s410_s11, 4294967168  ;;  %s20_s22 = sadd.s32 1, %s825_s22   ;;  %s1177_s18 = sld [smem:[#allocation12_spill]] }
 0x11c   : > { %p17_p6 = scmp.ge.s32.totalorder %s20_s22, 6   ;;  %s1178_s20 = sld [smem:[#allocation14_spill]] }
 0x11d   : > { %s1179_s28 = sld [smem:[#allocation15_spill]]  ;;  %s1180_s12 = smov %s789_s13 }
 0x11e   : > { %s1181_s13 = smov %s793_s14  ;;  %s1182_s14 = smov %s994_s1 }
 0x11f   : > { %s1183_s15 = smov %s801_s16  ;;  %s1184_s16 = smov %s805_s17 }
 0x120   : > { %s1185_s17 = smov %s989_s7  ;;  %s1186_s19 = smov %s821_s21 }
 0x121   :  { %19 = sbr.rel (!%p17_p6) target bundleno = 12 (0xc), region = 84 }
 0x123   : > { %s1187_s21 = smov %s1179_s28 }
 0x128   :  { %415 = vsyncpa [#allocation3], 1 }
 0x129   :  { %417 = vsyncpa [#allocation3 + $0x1], 1 }
 0x12a   :  { %418 = vsyncpa [#allocation6], 1 }
 0x12b   :  { %419 = vsyncpa [#allocation4], 1 }
 0x12c   :  { %421 = vsyncpa [#allocation4 + $0x1], 1 }

</bundles_post_ra>
